<compile_context>
chip_gen: v7x
topology: tpu7x:2x2x1
jax: 0.10.0
libtpu: 0.0.40
codegen_flags: <defaults>
</compile_context>

<pallas_src>
import functools

import jax
import jax.numpy as jnp
from jax import lax
from jax.experimental import pallas as pl
from jax.experimental.pallas import tpu as pltpu


def _round_up(x, m):
    return (x + m - 1) // m * m


def _cdiv(a, b):
    return (a + b - 1) // b


def fused_pool_fc_softmax_kernel(h_ref, mask_ref, w_ref, b_ref,
                                 logits_ref, probs_ref,
                                 acc_sum, acc_cnt, *, num_class):
    """Masked mean pool (streamed over S) + fc (MXU) + softmax.

    h_ref:      (TILE_B, TILE_S, H)  bf16 token embeddings chunk
    mask_ref:   (TILE_B, TILE_S, 1)  bf16 attention mask chunk
    w_ref:      (H, C_PAD)           f32 fc weight (pre-transposed, zero-padded)
    b_ref:      (1, C_PAD)           f32 fc bias   (zero-padded)
    logits_ref: (TILE_B, C_PAD)      f32
    probs_ref:  (TILE_B, C_PAD)      f32
    acc_sum:    (TILE_B, H)          f32 scratch (masked sum accumulator)
    acc_cnt:    (TILE_B, 1)          f32 scratch (token count accumulator)
    """
    k = pl.program_id(1)

    @pl.when(k == 0)
    def _():
        acc_sum[...] = jnp.zeros_like(acc_sum)
        acc_cnt[...] = jnp.zeros_like(acc_cnt)

    # Stream one chunk: upcast to f32 and accumulate the masked sum / count.
    h = h_ref[...].astype(jnp.float32)                   # (TILE_B, TILE_S, H)
    m = mask_ref[...].astype(jnp.float32)                # (TILE_B, TILE_S, 1)
    acc_sum[...] += jnp.sum(h * m, axis=1)               # (TILE_B, H)
    acc_cnt[...] += jnp.sum(m, axis=1)                   # (TILE_B, 1)

    @pl.when(k == pl.num_programs(1) - 1)
    def _():
        # Mean pool: EUP approximate reciprocal + one Newton step (no vdiv).
        count = jnp.maximum(acc_cnt[...], 1.0)
        inv = pl.reciprocal(count, approx=True)
        inv = inv * (2.0 - count * inv)
        rep = acc_sum[...] * inv                          # (TILE_B, H)

        # Dropout(p=0.1) is identity at inference. fc on the MXU, f32 accum.
        logits = jnp.dot(rep, w_ref[...],
                         preferred_element_type=jnp.float32) + b_ref[...]
        logits_ref[...] = logits                          # lane-dense store

        # Numerically stable softmax over the real classes only: padded class
        # lanes are pushed to -1e30 so exp() contributes ~0 to the denominator.
        c_pad = logits.shape[-1]
        col = lax.broadcasted_iota(jnp.int32, (1, c_pad), 1)
        masked = logits + jnp.where(col < num_class, 0.0, -1e30)
        mmax = jnp.max(masked, axis=-1, keepdims=True)
        e = jnp.exp(masked - mmax)
        denom = jnp.sum(e, axis=-1, keepdims=True)
        r = pl.reciprocal(denom, approx=True)
        r = r * (2.0 - denom * r)
        probs_ref[...] = e * r                            # lane-dense store


def softmax_nn_head_fused(h, attention_mask, w, b):
    """h: (B, S, H) f32 token embeddings, attention_mask: (B, S),
    w: (H, C) f32 fc weight (pre-transposed), b: (C,) f32 fc bias.
    Returns dict(logits=(B, C), probs=(B, C))."""
    B, S, H = h.shape
    C = w.shape[1]
    C_PAD = max(128, _round_up(C, 128))                   # lane-dense class axis

    # ---- Tiling: S reduction axis decouples VMEM from S. ----
    if S > 128:
        TILE_S = 128
        S_pad = _round_up(S, TILE_S)
    else:
        TILE_S = S                                        # single S step (full dim)
        S_pad = S

    # Per-step h-related VMEM: double-buffered bf16 chunk (2 * 2 B/elem) plus
    # the f32 mask-broadcast temp (4 B/elem)  ->  ~8 bytes per element.
    H_RELATED_BUDGET = 20 << 20                           # ~20 MiB; safe on v7x's 64 MiB
    per_row_bytes = TILE_S * H * 8
    cap = max(8, (H_RELATED_BUDGET // per_row_bytes) // 8 * 8)
    cap = min(cap, 512)

    # Minimize batch-padding waste, and keep >=2 parallel steps when possible
    # so both v7x TensorCores get work.
    n_b = max(1, _cdiv(B, cap))
    if n_b == 1 and B > 8:
        n_b = 2
    TILE_B = _round_up(_cdiv(B, n_b), 8)
    B_pad = _round_up(B, TILE_B)

    # ---- Pad + cast inputs (h / mask streamed as bf16, mem-bound). ----
    if B_pad != B or S_pad != S:
        # Padded rows/positions have mask == 0 -> no contribution; padded
        # batch rows are sliced off below.
        h = jnp.pad(h, ((0, B_pad - B), (0, S_pad - S), (0, 0)))
        attention_mask = jnp.pad(attention_mask,
                                 ((0, B_pad - B), (0, S_pad - S)))
    h_bf = h.astype(jnp.bfloat16)
    mask_bf = attention_mask.astype(jnp.bfloat16).reshape(B_pad, S_pad, 1)

    # Zero-pad fc params out to the lane-dense class width.
    w_pad = jnp.pad(w.astype(jnp.float32), ((0, 0), (0, C_PAD - C)))
    b_pad = jnp.pad(b.astype(jnp.float32), (0, C_PAD - C)).reshape(1, C_PAD)

    # ---- VMEM limit sized from the actual footprint (cap 48 MiB, safe on all
    # generations including v7x's 64 MiB physical VMEM). ----
    est_vmem = (
        2 * (TILE_B * TILE_S * H * 2 + TILE_B * TILE_S * 2)   # dbl-buffered bf16 inputs
        + TILE_B * TILE_S * H * 4                             # f32 broadcast temp
        + 2 * (H * C_PAD * 4 + C_PAD * 4)                     # w, b
        + 2 * 2 * TILE_B * C_PAD * 4                          # two dbl-buffered outputs
        + TILE_B * H * 4 + TILE_B * 4                         # accumulator scratch
    )
    vmem_limit = min(48 << 20, max(2 * est_vmem, 16 << 20))

    cost = pl.CostEstimate(
        flops=2 * B_pad * S_pad * H + 2 * B_pad * H * C_PAD,
        transcendentals=B_pad * C_PAD,
        bytes_accessed=(B_pad * S_pad * H * 2 + B_pad * S_pad * 2
                        + H * C_PAD * 4 + C_PAD * 4
                        + 2 * B_pad * C_PAD * 4),
    )

    kernel = functools.partial(fused_pool_fc_softmax_kernel, num_class=C)

    logits_p, probs_p = pl.pallas_call(
        kernel,
        out_shape=(
            jax.ShapeDtypeStruct((B_pad, C_PAD), jnp.float32),
            jax.ShapeDtypeStruct((B_pad, C_PAD), jnp.float32),
        ),
        grid=(B_pad // TILE_B, S_pad // TILE_S),
        in_specs=[
            pl.BlockSpec((TILE_B, TILE_S, H), lambda i, k: (i, k, 0)),
            pl.BlockSpec((TILE_B, TILE_S, 1), lambda i, k: (i, k, 0)),
            pl.BlockSpec((H, C_PAD), lambda i, k: (0, 0)),
            pl.BlockSpec((1, C_PAD), lambda i, k: (0, 0)),
        ],
        out_specs=(
            pl.BlockSpec((TILE_B, C_PAD), lambda i, k: (i, 0)),
            pl.BlockSpec((TILE_B, C_PAD), lambda i, k: (i, 0)),
        ),
        scratch_shapes=[
            pltpu.VMEM((TILE_B, H), jnp.float32),
            pltpu.VMEM((TILE_B, 1), jnp.float32),
        ],
        compiler_params=pltpu.CompilerParams(
            dimension_semantics=("parallel", "arbitrary"),  # megacore on v7x
            vmem_limit_bytes=int(vmem_limit),
        ),
        cost_estimate=cost,
    )(h_bf, mask_bf, w_pad, b_pad)

    return {"logits": logits_p[:B, :C], "probs": probs_p[:B, :C]}


def toy_encoder_embed(input_ids, token_type_ids, word_emb, type_emb):
    """Embedding-lookup half of the stand-in sentence encoder (plain JAX glue).

    The masked mean pooling is fused into the Pallas kernel.
    """
    # TODO(synk): the full BERT `sentence_encoder` (multi-layer transformer) is
    # not translated; this stand-in provides deterministic (B, S, H) features.
    # Fusing this gather into the kernel via scalar prefetch would save one
    # HBM round-trip of h but is left out here.
    return word_emb[input_ids] + type_emb[token_type_ids]   # (B, S, H)


def softmax_nn_forward(inputs, params):
    h = toy_encoder_embed(
        inputs["input_ids"],
        inputs["token_type_ids"],
        params["word_emb"],
        params["type_emb"],
    )
    # self.drop(rep): Dropout(p=0.1) is identity at inference time.
    return softmax_nn_head_fused(
        h, inputs["attention_mask"], params["fc_w"], params["fc_b"]
    )


def _reference_forward(inputs, params):
    """Pure-JAX reference for correctness checking."""
    h = toy_encoder_embed(
        inputs["input_ids"],
        inputs["token_type_ids"],
        params["word_emb"],
        params["type_emb"],
    )
    mask = inputs["attention_mask"].astype(jnp.float32)[..., None]
    rep = jnp.sum(h * mask, axis=1) / jnp.maximum(jnp.sum(mask, axis=1), 1.0)
    logits = rep @ params["fc_w"] + params["fc_b"]
    probs = jax.nn.softmax(logits, axis=-1)
    return {"logits": logits, "probs": probs}


if __name__ == "__main__":
    # Small shapes consistent with the module's forward:
    B, S, H, C, V = 2, 8, 32, 8, 16  # batch, seq, hidden_size, num_class, vocab

    key = jax.random.PRNGKey(0)
    k1, k2, k3, k4, k5 = jax.random.split(key, 5)

    params = {
        "word_emb": jax.random.normal(k1, (V, H), jnp.float32) * 0.02,
        "type_emb": jax.random.normal(k2, (2, H), jnp.float32) * 0.02,
        # nn.Linear(hidden, num_class): weight stored pre-transposed as (H, C).
        "fc_w": jax.random.normal(k3, (H, C), jnp.float32) * 0.1,
        "fc_b": jax.random.normal(k4, (C,), jnp.float32) * 0.1,
    }

    inputs = {
        "input_ids": jax.random.randint(k5, (B, S), 0, V, dtype=jnp.int32),
        "attention_mask": jnp.concatenate(
            [jnp.ones((B, S - 2), jnp.int32), jnp.zeros((B, 2), jnp.int32)], axis=1
        ),
        "token_type_ids": jnp.zeros((B, S), jnp.int32),
    }

    res = softmax_nn_forward(inputs, params)
    jax.block_until_ready(res["logits"])
    jax.block_until_ready(res["probs"])

    ref = _reference_forward(inputs, params)

    assert res["logits"].shape == (B, C)
    assert res["probs"].shape == (B, C)
    assert bool(jnp.allclose(jnp.sum(res["probs"], axis=-1), 1.0, atol=1e-4))
    assert bool(jnp.allclose(res["logits"], ref["logits"], atol=2e-3, rtol=2e-3))
    assert bool(jnp.allclose(res["probs"], ref["probs"], atol=2e-3, rtol=2e-3))

    print("KERNEL_OK")
</pallas_src>

<mosaic_0001>
module attributes {stable_mosaic.version = 11 : i64} {
  func.func @fused_pool_fc_softmax_kernel(%arg0: i32, %arg1: i32, %arg2: memref<8x8x32xbf16, #tpu.memory_space<vmem>>, %arg3: memref<8x8x1xbf16, #tpu.memory_space<vmem>>, %arg4: memref<32x128xf32, #tpu.memory_space<vmem>>, %arg5: memref<1x128xf32, #tpu.memory_space<vmem>>, %arg6: memref<8x128xf32, #tpu.memory_space<vmem>>, %arg7: memref<8x128xf32, #tpu.memory_space<vmem>>, %arg8: memref<8x32xf32, #tpu.memory_space<vmem>>, %arg9: memref<8x1xf32, #tpu.memory_space<vmem>>) attributes {dimension_semantics = [#tpu.dimension_semantics<parallel>, #tpu.dimension_semantics<arbitrary>], iteration_bounds = array<i64: 1, 1>, scalar_prefetch = 0 : i64, scratch_operands = 2 : i64, tpu.core_type = #tpu.core_type<tc>, window_params = [{transform_indices = @transform_0, window_bounds = array<i64: 8, 8, 32>}, {transform_indices = @transform_1, window_bounds = array<i64: 8, 8, 1>}, {pipeline_mode = #tpu.pipeline_mode<synchronous>, transform_indices = @transform_2, window_bounds = array<i64: 32, 128>}, {pipeline_mode = #tpu.pipeline_mode<synchronous>, transform_indices = @transform_3, window_bounds = array<i64: 1, 128>}, {transform_indices = @transform_4, window_bounds = array<i64: 8, 128>}, {transform_indices = @transform_5, window_bounds = array<i64: 8, 128>}]} {
    %c0_i32 = arith.constant 0 : i32
    %0 = arith.cmpi eq, %arg1, %c0_i32 : i32
    %1 = arith.extui %0 : i1 to i32
    %c0_i32_0 = arith.constant 0 : i32
    %2 = arith.cmpi ne, %1, %c0_i32_0 : i32
    scf.if %2 {
      %cst_17 = arith.constant 0.000000e+00 : f32
      %20 = vector.broadcast %cst_17 : f32 to vector<8x32xf32>
      %c0_18 = arith.constant 0 : index
      %c0_19 = arith.constant 0 : index
      %21 = vector.load %arg8[%c0_18, %c0_19] : memref<8x32xf32, #tpu.memory_space<vmem>>, vector<8x32xf32>
      tpu.vector_store %arg8[%c0_18, %c0_19], %20 {strides = array<i32>} : memref<8x32xf32, #tpu.memory_space<vmem>>, vector<8x32xf32>,
      %cst_20 = arith.constant 0.000000e+00 : f32
      %22 = vector.broadcast %cst_20 : f32 to vector<8x1xf32>
      %c0_21 = arith.constant 0 : index
      %c0_22 = arith.constant 0 : index
      %23 = vector.load %arg9[%c0_21, %c0_22] : memref<8x1xf32, #tpu.memory_space<vmem>>, vector<8x1xf32>
      tpu.vector_store %arg9[%c0_21, %c0_22], %22 {strides = array<i32>} : memref<8x1xf32, #tpu.memory_space<vmem>>, vector<8x1xf32>,
    } else {
    }
    %c0 = arith.constant 0 : index
    %c0_1 = arith.constant 0 : index
    %c0_2 = arith.constant 0 : index
    %3 = vector.load %arg2[%c0, %c0_1, %c0_2] : memref<8x8x32xbf16, #tpu.memory_space<vmem>>, vector<8x8x32xbf16>
    %4 = arith.extf %3 : vector<8x8x32xbf16> to vector<8x8x32xf32>
    %c0_3 = arith.constant 0 : index
    %c0_4 = arith.constant 0 : index
    %c0_5 = arith.constant 0 : index
    %5 = vector.load %arg3[%c0_3, %c0_4, %c0_5] : memref<8x8x1xbf16, #tpu.memory_space<vmem>>, vector<8x8x1xbf16>
    %6 = arith.extf %5 : vector<8x8x1xbf16> to vector<8x8x1xf32>
    %c0_6 = arith.constant 0 : index
    %c0_7 = arith.constant 0 : index
    %7 = vector.load %arg8[%c0_6, %c0_7] : memref<8x32xf32, #tpu.memory_space<vmem>>, vector<8x32xf32>
    %8 = vector.broadcast %6 : vector<8x8x1xf32> to vector<8x8x32xf32>
    %9 = arith.mulf %4, %8 : vector<8x8x32xf32>
    %cst = arith.constant dense<0.000000e+00> : vector<8x32xf32>
    %10 = vector.multi_reduction <add>, %9, %cst [1] : vector<8x8x32xf32> to vector<8x32xf32>
    %11 = arith.addf %7, %10 : vector<8x32xf32>
    %c0_8 = arith.constant 0 : index
    %c0_9 = arith.constant 0 : index
    %12 = vector.load %arg8[%c0_8, %c0_9] : memref<8x32xf32, #tpu.memory_space<vmem>>, vector<8x32xf32>
    tpu.vector_store %arg8[%c0_8, %c0_9], %11 {strides = array<i32>} : memref<8x32xf32, #tpu.memory_space<vmem>>, vector<8x32xf32>,
    %c0_10 = arith.constant 0 : index
    %c0_11 = arith.constant 0 : index
    %13 = vector.load %arg9[%c0_10, %c0_11] : memref<8x1xf32, #tpu.memory_space<vmem>>, vector<8x1xf32>
    %cst_12 = arith.constant dense<0.000000e+00> : vector<8x1xf32>
    %14 = vector.multi_reduction <add>, %6, %cst_12 [1] : vector<8x8x1xf32> to vector<8x1xf32>
    %15 = arith.addf %13, %14 : vector<8x1xf32>
    %c0_13 = arith.constant 0 : index
    %c0_14 = arith.constant 0 : index
    %16 = vector.load %arg9[%c0_13, %c0_14] : memref<8x1xf32, #tpu.memory_space<vmem>>, vector<8x1xf32>
    tpu.vector_store %arg9[%c0_13, %c0_14], %15 {strides = array<i32>} : memref<8x1xf32, #tpu.memory_space<vmem>>, vector<8x1xf32>,
    %c0_i32_15 = arith.constant 0 : i32
    %17 = arith.cmpi eq, %arg1, %c0_i32_15 : i32
    %18 = arith.extui %17 : i1 to i32
    %c0_i32_16 = arith.constant 0 : i32
    %19 = arith.cmpi ne, %18, %c0_i32_16 : i32
    scf.if %19 {
      %c0_17 = arith.constant 0 : index
      %c0_18 = arith.constant 0 : index
      %20 = vector.load %arg9[%c0_17, %c0_18] : memref<8x1xf32, #tpu.memory_space<vmem>>, vector<8x1xf32>
      %cst_19 = arith.constant 1.000000e+00 : f32
      %21 = vector.broadcast %cst_19 : f32 to vector<8x1xf32>
      %22 = arith.maximumf %20, %21 : vector<8x1xf32>
      %23 = tpu.reciprocal %22 {approx = true} : vector<8x1xf32> -> vector<8x1xf32>
      %24 = arith.mulf %22, %23 : vector<8x1xf32>
      %cst_20 = arith.constant 2.000000e+00 : f32
      %25 = vector.broadcast %cst_20 : f32 to vector<8x1xf32>
      %26 = arith.subf %25, %24 : vector<8x1xf32>
      %27 = arith.mulf %23, %26 : vector<8x1xf32>
      %c0_21 = arith.constant 0 : index
      %c0_22 = arith.constant 0 : index
      %28 = vector.load %arg8[%c0_21, %c0_22] : memref<8x32xf32, #tpu.memory_space<vmem>>, vector<8x32xf32>
      %29 = vector.broadcast %27 : vector<8x1xf32> to vector<8x32xf32>
      %30 = arith.mulf %28, %29 : vector<8x32xf32>
      %c0_23 = arith.constant 0 : index
      %c0_24 = arith.constant 0 : index
      %31 = vector.load %arg4[%c0_23, %c0_24] : memref<32x128xf32, #tpu.memory_space<vmem>>, vector<32x128xf32>
      %cst_25 = arith.constant dense<0.000000e+00> : vector<8x128xf32>
      %32 = tpu.matmul %30, %31, %cst_25 {dimension_numbers = #tpu.dot_dimension_numbers<[1], [0], [0], [1], [0, 0, 1, 1], [], []>} : vector<8x32xf32>, vector<32x128xf32>, vector<8x128xf32> -> vector<8x128xf32>
      %c0_26 = arith.constant 0 : index
      %c0_27 = arith.constant 0 : index
      %33 = vector.load %arg5[%c0_26, %c0_27] : memref<1x128xf32, #tpu.memory_space<vmem>>, vector<1x128xf32>
      %34 = vector.broadcast %33 : vector<1x128xf32> to vector<8x128xf32>
      %35 = arith.addf %32, %34 : vector<8x128xf32>
      %c0_28 = arith.constant 0 : index
      %c0_29 = arith.constant 0 : index
      %36 = vector.load %arg6[%c0_28, %c0_29] : memref<8x128xf32, #tpu.memory_space<vmem>>, vector<8x128xf32>
      tpu.vector_store %arg6[%c0_28, %c0_29], %35 {strides = array<i32>} : memref<8x128xf32, #tpu.memory_space<vmem>>, vector<8x128xf32>,
      %37 = tpu.iota {dimensions = array<i32: 1>} : vector<1x128xi32>
      %c8_i32 = arith.constant 8 : i32
      %38 = vector.broadcast %c8_i32 : i32 to vector<1x128xi32>
      %39 = arith.cmpi slt, %37, %38 : vector<1x128xi32>
      %cst_30 = arith.constant 0.000000e+00 : f32
      %cst_31 = arith.constant -1.000000e+30 : f32
      %40 = vector.broadcast %cst_30 : f32 to vector<1x128xf32>
      %41 = vector.broadcast %cst_31 : f32 to vector<1x128xf32>
      %42 = arith.select %39, %40, %41 : vector<1x128xi1>, vector<1x128xf32>
      %43 = vector.broadcast %42 : vector<1x128xf32> to vector<8x128xf32>
      %44 = arith.addf %35, %43 : vector<8x128xf32>
      %cst_32 = arith.constant dense<0xFF800000> : vector<8xf32>
      %45 = vector.multi_reduction <maximumf>, %44, %cst_32 [1] : vector<8x128xf32> to vector<8xf32>
      %46 = vector.shape_cast %45 : vector<8xf32> to vector<8x1xf32>
      %47 = vector.broadcast %46 : vector<8x1xf32> to vector<8x128xf32>
      %48 = arith.subf %44, %47 : vector<8x128xf32>
      %49 = math.exp %48 : vector<8x128xf32>
      %cst_33 = arith.constant dense<0.000000e+00> : vector<8xf32>
      %50 = vector.multi_reduction <add>, %49, %cst_33 [1] : vector<8x128xf32> to vector<8xf32>
      %51 = vector.shape_cast %50 : vector<8xf32> to vector<8x1xf32>
      %52 = tpu.reciprocal %51 {approx = true} : vector<8x1xf32> -> vector<8x1xf32>
      %53 = arith.mulf %51, %52 : vector<8x1xf32>
      %cst_34 = arith.constant 2.000000e+00 : f32
      %54 = vector.broadcast %cst_34 : f32 to vector<8x1xf32>
      %55 = arith.subf %54, %53 : vector<8x1xf32>
      %56 = arith.mulf %52, %55 : vector<8x1xf32>
      %57 = vector.broadcast %56 : vector<8x1xf32> to vector<8x128xf32>
      %58 = arith.mulf %49, %57 : vector<8x128xf32>
      %c0_35 = arith.constant 0 : index
      %c0_36 = arith.constant 0 : index
      %59 = vector.load %arg7[%c0_35, %c0_36] : memref<8x128xf32, #tpu.memory_space<vmem>>, vector<8x128xf32>
      tpu.vector_store %arg7[%c0_35, %c0_36], %58 {strides = array<i32>} : memref<8x128xf32, #tpu.memory_space<vmem>>, vector<8x128xf32>,
    } else {
    }
    return
  }
  func.func @transform_0(%arg0: i32, %arg1: i32) -> (i32, i32, i32) {
    %c0_i32 = arith.constant 0 : i32
    %c0_i32_0 = arith.constant 0 : i32
    return %arg0, %arg1, %c0_i32 : i32, i32, i32
  }
  func.func @transform_1(%arg0: i32, %arg1: i32) -> (i32, i32, i32) {
    %c0_i32 = arith.constant 0 : i32
    %c0_i32_0 = arith.constant 0 : i32
    return %arg0, %arg1, %c0_i32 : i32, i32, i32
  }
  func.func @transform_2(%arg0: i32, %arg1: i32) -> (i32, i32) {
    %c0_i32 = arith.constant 0 : i32
    %c0_i32_0 = arith.constant 0 : i32
    %c0_i32_1 = arith.constant 0 : i32
    return %c0_i32, %c0_i32_0 : i32, i32
  }
  func.func @transform_3(%arg0: i32, %arg1: i32) -> (i32, i32) {
    %c0_i32 = arith.constant 0 : i32
    %c0_i32_0 = arith.constant 0 : i32
    %c0_i32_1 = arith.constant 0 : i32
    return %c0_i32, %c0_i32_0 : i32, i32
  }
  func.func @transform_4(%arg0: i32, %arg1: i32) -> (i32, i32) {
    %c0_i32 = arith.constant 0 : i32
    %c0_i32_0 = arith.constant 0 : i32
    return %arg0, %c0_i32 : i32, i32
  }
  func.func @transform_5(%arg0: i32, %arg1: i32) -> (i32, i32) {
    %c0_i32 = arith.constant 0 : i32
    %c0_i32_0 = arith.constant 0 : i32
    return %arg0, %c0_i32 : i32, i32
  }
}

</mosaic_0001>

<bundles_post_ra>
// kernel: tpu_custom_call.1
= control target key start
LH: loop header
LB: loop body
LE: loop exit
PB: predicated region body
PF: predicated region fallthrough
CT: control target
= control target key end

     0   :  { %11 = vsyncpa [#allocation5], 0  ;;  %s743_s0 = inlined_call_operand.vmem [shape: bf16[8,8,32], index: 0, kind: input, shape index: {}]   ;;  %s744_s1 = inlined_call_operand.vmem [shape: bf16[8,8,1], index: 1, kind: input, shape index: {}]   ;;  %s745_s2 = inlined_call_operand.hbm [shape: f32[32,128], index: 2, kind: input, shape index: {}]   ;;  %s746_s3 = inlined_call_operand.vmem [shape: f32[1,128], index: 3, kind: input, shape index: {}]   ;;  %s747_s4 = inlined_call_operand.hbm [shape: f32[8,128], index: 4, kind: output, shape index: {0}]   ;;  %s748_s5 = inlined_call_operand.hbm [shape: f32[8,128], index: 5, kind: output, shape index: {1}]  }
   0x1   :  { %12 = vsyncpa [#allocation6], 0 }
   0x2   :  { %13 = vsyncpa [#allocation9], 0  ;;  %s602_s18 = smov [#allocation4]   ;;  %s530_s22 = scalar_lea.hbm %s745_s2, 512 }
   0x3   :  { %s23_s19 = sshll.u32 %s602_s18, 4  ;;  %p531_p0 = scmp.ne.s32.totalorder %s745_s2, %s530_s22  ;;  %s24_s19 = int_to_ptr.vmem [resolvable:$true] %s23_s19 }
   0x4   :  { %p534_p1 = scmp.lt.u32.totalorder %s530_s22, %s745_s2 }
   0x6   :  { %p536_p2 = pnand %p534_p1, %p531_p0 }
   0x8   :  { %539 = shalt.err (!%p536_p2)
}
   0x9   :  { %s540_s27 = scalar_lea.vmem %s24_s19, 512  ;;  %p545_p4 = scmp.lt.s32.totalorder %s24_s19, %s24_s19 }
   0xa   :  { %p541_p3 = scmp.ne.s32.totalorder %s24_s19, %s540_s27  ;;  %p546_p5 = scmp.lt.s32.totalorder %s540_s27, %s540_s27 }
   0xc   :  { %p547_p6 = por %p546_p5, %p545_p4 }
   0xe   :  { %p548_p7 = pnand %p547_p6, %p541_p3 }
  0x10   :  { %551 = shalt.err (!%p548_p7)
}
  0x11   :  { %s603_s28 = smov 128   ;;  %s604_s29 = smov 8  }
  0x12   :  { %29 = dma.hbm_to_vmem [thread:$0]  %s745_s2, 512, %s24_s19, [#allocation5], %s603_s28, %s603_s28, %s604_s29  }
  0x13   :  { %596 = dma.done.wait [#allocation5], 512  }
  0x14   :  { %597 = vsyncadd [#allocation5], 4294966784  ;;  %v605_v0 = vmov 0   ;;  %vm41_vm0 = vcmask 7168   ;;  %v606_v1 = vmov 0.0   ;;  %vm39_vm1 = vcmask 261120  }
  0x15   :  { %502 = vset.pattern.permute.xlu0 %v605_v0  ;;  %513 = vset.pattern.permute.xlu1 %v605_v0  ;;  %42 = vst.msk [vmem:[#allocation3] sm:$0xff] %vm41_vm0, %v606_v1  ;;  %v449_v2 = vld [vmem:[%s744_s1] sm:$0xff]   ;;  %v468_v3 = vld [vmem:[%s744_s1 + $0x10] sm:$0xff]   ;;  %v467_v4 = vld [vmem:[%s744_s1 + $0x8] sm:$0xff]   ;;  %vm189_vm2 = vcmask 1041409   ;;  %vm191_vm3 = vcmask 1042434  }
  0x16   :  { %40 = vst.msk [vmem:[#allocation2] sm:$0xff] %vm39_vm1, %v606_v1  ;;  %v450_v5 = vunpack.c.l.bf16 %v449_v2  ;;  %v451_v6 = vunpack.c.h.bf16 %v449_v2  ;;  %v458_v7 = vunpack.c.l.bf16 %v468_v3  ;;  %v459_v8 = vunpack.c.h.bf16 %v468_v3  ;;  %v469_v9 = vld [vmem:[%s744_s1 + $0x18] sm:$0xff]   ;;  %s610_s22 = smov [#allocation7]  }
  0x17   :  { %v454_v10 = vunpack.c.l.bf16 %v467_v4  ;;  %v455_v11 = vunpack.c.h.bf16 %v467_v4  ;;  %v462_v12 = vunpack.c.l.bf16 %v469_v9  ;;  %v463_v13 = vunpack.c.h.bf16 %v469_v9  ;;  %s407_s23 = sshll.u32 %s610_s22, 4  ;;  %s408_s23 = int_to_ptr.vmem [resolvable:$true] %s407_s23 }
  0x18   :  { %v215_v14 = vsel %vm41_vm0, %v451_v6, 0.0  ;;  %v503_v15 = vpack.i.bf16 %v451_v6, %v450_v5  ;;  %v208_v16 = vsel %vm41_vm0, %v450_v5, 0.0  ;;  %v243_v17 = vsel %vm41_vm0, %v459_v8, 0.0  ;;  %s552_s24 = scalar_lea.vmem %s408_s23, 128  ;;  %p557_p9 = scmp.lt.s32.totalorder %s408_s23, %s408_s23 }
  0x19   :  { %v216_v18 = vrot.slane %v215_v14, 4  ;;  %v209_v19 = vrot.slane %v208_v16, 4  ;;  %v244_v20 = vrot.slane %v243_v17, 4  ;;  %v514_v21 = vpack.i.bf16 %v459_v8, %v458_v7  ;;  %p553_p8 = scmp.ne.s32.totalorder %s408_s23, %s552_s24  ;;  %p558_p10 = scmp.lt.s32.totalorder %s552_s24, %s552_s24 }
  0x1a   :  { %504 = vperm.xlu0 %502, %v503_v15   ;;  %v236_v22 = vsel %vm41_vm0, %v458_v7, 0.0  ;;  %v229_v23 = vsel %vm41_vm0, %v455_v11, 0.0  ;;  %v508_v24 = vpack.i.bf16 %v455_v11, %v454_v10  ;;  %v222_v25 = vsel %vm41_vm0, %v454_v10, 0.0 }
  0x1b   :  { %v217_v26 = vadd.f32 %v216_v18, %v215_v14  ;;  %v210_v27 = vadd.f32 %v209_v19, %v208_v16  ;;  %v245_v28 = vadd.f32 %v244_v20, %v243_v17  ;;  %515 = vperm.xlu1 %513, %v514_v21   ;;  %v237_v29 = vrot.slane %v236_v22, 4  ;;  %p559_p11 = por %p558_p10, %p557_p9 }
  0x1c   :  { %v230_v30 = vrot.slane %v229_v23, 4  ;;  %v223_v31 = vrot.slane %v222_v25, 4  ;;  %v257_v32 = vsel %vm41_vm0, %v463_v13, 0.0  ;;  %v519_v33 = vpack.i.bf16 %v463_v13, %v462_v12  ;;  %v206_v16 = vld [vmem:[#allocation3] sm:$0xff] }
  0x1d   :  { %v218_v34 = vrot.slane %v217_v26, 2  ;;  %v211_v35 = vrot.slane %v210_v27, 2  ;;  %v246_v36 = vrot.slane %v245_v28, 2  ;;  %v238_v37 = vadd.f32 %v237_v29, %v236_v22  ;;  %v298_v22 = vld [vmem:[#allocation4] sm:$0xff]  ;;  %p560_p12 = pnand %p559_p11, %p553_p8 }
  0x1e   :  { %v231_v38 = vadd.f32 %v230_v30, %v229_v23  ;;  %v224_v39 = vadd.f32 %v223_v31, %v222_v25  ;;  %509 = vperm.xlu0 %502, %v508_v24   ;;  %v258_v40 = vrot.slane %v257_v32, 4  ;;  %v250_v41 = vsel %vm41_vm0, %v462_v12, 0.0  ;;  %v299_v23 = vld [vmem:[#allocation4 + $0x8] sm:$0xff]  ;;  %v300_v24 = vld [vmem:[#allocation4 + $0x10] sm:$0xff] }
  0x1f   :  { %v219_v42 = vadd.f32 %v218_v34, %v217_v26  ;;  %v212_v43 = vadd.f32 %v211_v35, %v210_v27  ;;  %v247_v44 = vadd.f32 %v246_v36, %v245_v28  ;;  %v239_v45 = vrot.slane %v238_v37, 2  ;;  %520 = vperm.xlu1 %513, %v519_v33   ;;  %v301_v27 = vld [vmem:[#allocation4 + $0x18] sm:$0xff]  ;;  %v433_v33 = vld [vmem:[%s743_s0] sm:$0xff]   ;;  %v465_v34 = vld [vmem:[%s743_s0 + $0x10] sm:$0xff]  }
  0x20   :  { %v232_v46 = vrot.slane %v231_v38, 2  ;;  %v225_v47 = vrot.slane %v224_v39, 2  ;;  %v259_v48 = vadd.f32 %v258_v40, %v257_v32  ;;  %v251_v49 = vrot.slane %v250_v41, 4  ;;  %v464_v40 = vld [vmem:[%s743_s0 + $0x8] sm:$0xff]  }
  0x21   :  { %v220_v50 = vrot.slane %v219_v42, 1  ;;  %v213_v51 = vrot.slane %v212_v43, 1  ;;  %v240_v52 = vadd.f32 %v239_v45, %v238_v37  ;;  %v248_v59 = vrot.slane %v247_v44, 1 }
  0x22   :  { %v233_v53 = vadd.f32 %v232_v46, %v231_v38  ;;  %v226_v54 = vadd.f32 %v225_v47, %v224_v39  ;;  %v260_v55 = vrot.slane %v259_v48, 2  ;;  %v252_v56 = vadd.f32 %v251_v49, %v250_v41 }
  0x23   :  { %v221_v57 = vadd.f32 %v220_v50, %v219_v42  ;;  %v214_v58 = vadd.f32 %v213_v51, %v212_v43  ;;  %v241_v60 = vrot.slane %v240_v52, 1  ;;  %vm193_vm4 = vcmask 1043459   ;;  %v466_v43 = vld [vmem:[%s743_s0 + $0x18] sm:$0xff]  }
  0x24   :  { %v234_v61 = vrot.slane %v233_v53, 1  ;;  %v227_v62 = vrot.slane %v226_v54, 1  ;;  %v261_v63 = vadd.f32 %v260_v55, %v259_v48  ;;  %v253_v0 = vrot.slane %v252_v56, 2 }
  0x25   :  { %v272_v2 = vsel %vm189_vm2, %v221_v57, %v214_v58  ;;  %v242_v3 = vadd.f32 %v241_v60, %v240_v52  ;;  %v249_v8 = vadd.f32 %v248_v59, %v247_v44  ;;  %vm195_vm5 = vcmask 1044484  }
  0x26   :  { %v235_v4 = vadd.f32 %v234_v61, %v233_v53  ;;  %v228_v5 = vadd.f32 %v227_v62, %v226_v54  ;;  %v262_v6 = vrot.slane %v261_v63, 1  ;;  %v254_v7 = vadd.f32 %v253_v0, %v252_v56 }
  0x27   :  { %vm197_vm6 = vcmask 1045509   ;;  %vm199_vm7 = vcmask 1046534   ;;  %vm201_vm8 = vcmask 1047559   ;;  %v607_v25 = vmov 0.0|0.0  }
  0x28   :  { %v273_v9 = vsel %vm191_vm3, %v228_v5, %v272_v2  ;;  %v255_v10 = vrot.slane %v254_v7, 1  ;;  %v263_v12 = vadd.f32 %v262_v6, %v261_v63  ;;  %486 = vmatprep.subr.bf16.mxu0 %v607_v25  ;;  %v487_v26 = vpack.c.bf16 %v299_v23, %v298_v22 }
  0x29   :  { %v274_v11 = vsel %vm193_vm4, %v235_v4, %v273_v9  ;;  %v490_v28 = vpack.c.bf16 %v301_v27, %v300_v24  ;;  %vm608_vm9 = vmmov 0   ;;  %v434_v35 = vunpack.c.l.bf16 %v433_v33 }
  0x2a   :  { %v275_v13 = vsel %vm195_vm5, %v242_v3, %v274_v11  ;;  %v256_v14 = vadd.f32 %v255_v10, %v254_v7  ;;  %488 = vmatpush3.bf16.msra.mxu0 %v487_v26  ;;  %483 = vmatprep.mubr.msk.f32.mxu0 %vm608_vm9, %v606_v1  ;;  %v435_v36 = vunpack.c.h.bf16 %v433_v33  ;;  %v442_v38 = vunpack.c.l.bf16 %v465_v34 }
  0x2b   :  { %v276_v15 = vsel %vm197_vm6, %v249_v8, %v275_v13  ;;  %489 = vmatprep.subr.bf16.mxu0 %v607_v25  ;;  %v443_v39 = vunpack.c.h.bf16 %v465_v34  ;;  %v438_v48 = vunpack.c.l.bf16 %v464_v40  ;;  %v439_v49 = vunpack.c.h.bf16 %v464_v40 }
  0x2c   :  { %v277_v17 = vsel %vm199_vm7, %v256_v14, %v276_v15  ;;  %v446_v53 = vunpack.c.l.bf16 %v466_v43  ;;  %v447_v54 = vunpack.c.h.bf16 %v466_v43 }
  0x2d   :  { %v278_v18 = vsel %vm201_vm8, %v263_v12, %v277_v17 }
  0x2e   :  { %v280_v19 = vadd.f32 %v278_v18, %v206_v16  ;;  %491 = vmatpush3.bf16.msra.mxu0 %v490_v28 }
  0x30   :  { %281 = vst.msk [vmem:[#allocation3] sm:$0xff] %vm41_vm0, %v280_v19 }
  0x37   :  { %v285_v20 = vld [vmem:[#allocation3] sm:$0xff] }
  0x38   :  { %v286_v21 = vmax.f32 %v285_v20, 1.0 }
  0x3a   :  { %524 = vrcp.f32 %v286_v21 }
  0x44   :  { %v525_v29 = vpop.eup %524 }
  0x45   :  { %v288_v30 = vmul.f32 %v525_v29, %v286_v21 }
  0x47   :  { %v289_v31 = vsub.f32 2.0, %v288_v30 }
  0x49   :  { %v290_v32 = vmul.f32 %v525_v29, %v289_v31 }
  0x4b   :  { %294 = vperm.xlu0 %502, %v290_v32  }
  0x99   :  { %v505_v37 = vpop.permute.xlu0 %504 }
  0x9a   :  { %v507_v41 = vunpack.i.h.bf16 %v505_v37  ;;  %v506_v42 = vunpack.i.l.bf16 %v505_v37  ;;  %v516_v1 = vpop.permute.xlu1 %515 }
  0x9b   :  { %v518_v44 = vunpack.i.h.bf16 %v516_v1  ;;  %v517_v45 = vunpack.i.l.bf16 %v516_v1 }
  0x9c   :  { %v116_v46 = vmul.f32 %v506_v42, %v434_v35  ;;  %v117_v47 = vmul.f32 %v507_v41, %v435_v36 }
  0x9d   :  { %v120_v50 = vmul.f32 %v517_v45, %v442_v38  ;;  %v121_v51 = vmul.f32 %v518_v44, %v443_v39  ;;  %v510_v52 = vpop.permute.xlu0 %509 }
  0x9e   :  { %v125_v55 = vsel %vm39_vm1, %v116_v46, 0.0  ;;  %v132_v56 = vsel %vm39_vm1, %v117_v47, 0.0  ;;  %v512_v57 = vunpack.i.h.bf16 %v510_v52  ;;  %v511_v58 = vunpack.i.l.bf16 %v510_v52  ;;  %v521_v59 = vpop.permute.xlu1 %520 }
  0x9f   :  { %v126_v60 = vrot.slane %v125_v55, 4  ;;  %v133_v61 = vrot.slane %v132_v56, 4  ;;  %v153_v62 = vsel %vm39_vm1, %v120_v50, 0.0  ;;  %v160_v63 = vsel %vm39_vm1, %v121_v51, 0.0 }
  0xa0   :  { %v154_v0 = vrot.slane %v153_v62, 4  ;;  %v161_v2 = vrot.slane %v160_v63, 4  ;;  %v118_v3 = vmul.f32 %v511_v58, %v438_v48  ;;  %v119_v4 = vmul.f32 %v512_v57, %v439_v49 }
  0xa1   :  { %v127_v5 = vadd.f32 %v126_v60, %v125_v55  ;;  %v134_v6 = vadd.f32 %v133_v61, %v132_v56  ;;  %v523_v7 = vunpack.i.h.bf16 %v521_v59  ;;  %v522_v8 = vunpack.i.l.bf16 %v521_v59  ;;  %v75_v61 = vld [vmem:[#allocation2] sm:$0xff] }
  0xa2   :  { %v155_v9 = vadd.f32 %v154_v0, %v153_v62  ;;  %v162_v10 = vadd.f32 %v161_v2, %v160_v63  ;;  %v139_v11 = vsel %vm39_vm1, %v118_v3, 0.0  ;;  %v146_v12 = vsel %vm39_vm1, %v119_v4, 0.0 }
  0xa3   :  { %v128_v13 = vrot.slane %v127_v5, 2  ;;  %v135_v14 = vrot.slane %v134_v6, 2  ;;  %v140_v15 = vrot.slane %v139_v11, 4  ;;  %v147_v16 = vrot.slane %v146_v12, 4 }
  0xa4   :  { %v156_v17 = vrot.slane %v155_v9, 2  ;;  %v163_v18 = vrot.slane %v162_v10, 2  ;;  %v122_v19 = vmul.f32 %v522_v8, %v446_v53  ;;  %v123_v20 = vmul.f32 %v523_v7, %v447_v54  ;;  %v430_v7 = vld [vmem:[%s746_s3] ss:$0 sm:$0xff] }
  0xa5   :  { %v129_v21 = vadd.f32 %v128_v13, %v127_v5  ;;  %v136_v22 = vadd.f32 %v135_v14, %v134_v6  ;;  %v141_v23 = vadd.f32 %v140_v15, %v139_v11  ;;  %v148_v24 = vadd.f32 %v147_v16, %v146_v12 }
  0xa6   :  { %v157_v25 = vadd.f32 %v156_v17, %v155_v9  ;;  %v164_v26 = vadd.f32 %v163_v18, %v162_v10  ;;  %v167_v27 = vsel %vm39_vm1, %v122_v19, 0.0  ;;  %v174_v28 = vsel %vm39_vm1, %v123_v20, 0.0 }
  0xa7   :  { %v130_v29 = vrot.slane %v129_v21, 1  ;;  %v137_v30 = vrot.slane %v136_v22, 1  ;;  %v142_v31 = vrot.slane %v141_v23, 2  ;;  %v149_v32 = vrot.slane %v148_v24, 2 }
  0xa8   :  { %v158_v33 = vrot.slane %v157_v25, 1  ;;  %v168_v34 = vrot.slane %v167_v27, 4  ;;  %v175_v35 = vrot.slane %v174_v28, 4  ;;  %v165_v40 = vrot.slane %v164_v26, 1 }
  0xa9   :  { %v131_v36 = vadd.f32 %v130_v29, %v129_v21  ;;  %v138_v37 = vadd.f32 %v137_v30, %v136_v22  ;;  %v143_v38 = vadd.f32 %v142_v31, %v141_v23  ;;  %v150_v39 = vadd.f32 %v149_v32, %v148_v24 }
  0xaa   :  { %v169_v41 = vadd.f32 %v168_v34, %v167_v27  ;;  %v176_v42 = vadd.f32 %v175_v35, %v174_v28  ;;  %v159_v47 = vadd.f32 %v158_v33, %v157_v25  ;;  %v166_v50 = vadd.f32 %v165_v40, %v164_v26 }
  0xab   :  { %v144_v1 = vrot.slane %v143_v38, 1  ;;  %v151_v43 = vrot.slane %v150_v39, 1  ;;  %v190_v44 = vsel %vm189_vm2, %v138_v37, %v131_v36  ;;  %v383_v5 = vlaneseq }
  0xac   :  { %v170_v45 = vrot.slane %v169_v41, 2  ;;  %v177_v46 = vrot.slane %v176_v42, 2  ;;  %v609_v9 = vmov -1e+30  }
  0xad   :  { %v145_v48 = vadd.f32 %v144_v1, %v143_v38  ;;  %v152_v49 = vadd.f32 %v151_v43, %v150_v39  ;;  %v384_v6 = vand.u32 127, %v383_v5 }
  0xae   :  { %v171_v51 = vadd.f32 %v170_v45, %v169_v41  ;;  %v178_v52 = vadd.f32 %v177_v46, %v176_v42 }
  0xaf   :  { %v192_v53 = vsel %vm191_vm3, %v145_v48, %v190_v44  ;;  %vm385_vm10 = vcmp.lt.s32.totalorder %v384_v6, 8 }
  0xb0   :  { %v194_v54 = vsel %vm193_vm4, %v152_v49, %v192_v53  ;;  %v172_v55 = vrot.slane %v171_v51, 1  ;;  %v179_v56 = vrot.slane %v178_v52, 1  ;;  %v386_v10 = vsel %vm385_vm10, 0.0, %v609_v9 }
  0xb1   :  { %v196_v57 = vsel %vm195_vm5, %v159_v47, %v194_v54 }
  0xb2   :  { %v173_v58 = vadd.f32 %v172_v55, %v171_v51  ;;  %v180_v59 = vadd.f32 %v179_v56, %v178_v52  ;;  %v198_v60 = vsel %vm197_vm6, %v166_v50, %v196_v57 }
  0xb4   :  { %v200_v62 = vsel %vm199_vm7, %v173_v58, %v198_v60 }
  0xb5   :  { %v202_v63 = vsel %vm201_vm8, %v180_v59, %v200_v62 }
  0xb6   :  { %v204_v0 = vadd.f32 %v202_v63, %v75_v61 }
  0xb8   :  { %205 = vst.msk [vmem:[#allocation2] sm:$0xff] %vm39_vm1, %v204_v0 }
  0xbf   :  { %v291_v3 = vld [vmem:[#allocation2] sm:$0xff] }
  0xca   :  { %v295_v2 = vpop.permute.xlu0 %294 }
  0xcb   :  { %v297_v4 = vmul.f32 %v295_v2, %v291_v3 }
  0xcd   :  { %484 = vmatmul.mubr.msk.f32.vlgmr.msra.gmra.mrb[0].mxu0 %vm39_vm1, %v297_v4 }
 0x1a0   :  { %v378_v8 = vpop.f32.mrb[0].mxu0 }
 0x1a1   :  { %v379_v11 = vadd.f32 %v430_v7, %v378_v8  ;;  %v485_v12 = vpop.f32.mrb[1].mxu0 }
 0x1a3   :  { %382 = vst [vmem:[#allocation7] sm:$0xff] %v379_v11  ;;  %v387_v13 = vadd.f32 %v386_v10, %v379_v11 }
 0x1a5   :  { %388 = vmax.xlane.f32.xlu1 %v387_v13 }
 0x232   :  { %v389_v14 = vpop.xlane.xlu1 %388 }
 0x233   :  { %v390_v15 = vsub.f32 %v387_v13, %v389_v14 }
 0x235   :  { %v391_v16 = vmul.f32 1.442695, %v390_v15 }
 0x237   :  { %526 = vpow2.f32 %v391_v16 }
 0x241   :  { %v527_v17 = vpop.eup %526 }
 0x242   :  { %393 = vadd.xlane.f32.xlu0 %v527_v17 }
 0x243   :  { %563 = shalt.err (!%p560_p12)
}
 0x244   :  { %s564_s26 = scalar_lea.hbm %s747_s4, 128 }
 0x245   :  { %p565_p13 = scmp.ne.s32.totalorder %s747_s4, %s564_s26  ;;  %p568_p0 = scmp.lt.u32.totalorder %s564_s26, %s747_s4 }
 0x247   :  { %p570_p1 = pnand %p568_p0, %p565_p13 }
 0x249   :  { %573 = shalt.err (!%p570_p1)
}
 0x24a   :  { %410 = dma.vmem_to_hbm [thread:$0]  %s408_s23, 128, %s747_s4, [#allocation6]  }
 0x24b   :  { %s611_s8 = smov [#allocation8]  }
 0x24c   :  { %s417_s9 = sshll.u32 %s611_s8, 4  ;;  %s418_s9 = int_to_ptr.vmem [resolvable:$true] %s417_s9 }
 0x24d   :  { %s574_s2 = scalar_lea.vmem %s418_s9, 128  ;;  %p579_p3 = scmp.lt.s32.totalorder %s418_s9, %s418_s9 }
 0x24e   :  { %p575_p2 = scmp.ne.s32.totalorder %s418_s9, %s574_s2  ;;  %p580_p4 = scmp.lt.s32.totalorder %s574_s2, %s574_s2 }
 0x250   :  { %p581_p5 = por %p580_p4, %p579_p3 }
 0x252   :  { %p582_p6 = pnand %p581_p5, %p575_p2 }
 0x2cf   :  { %v394_v18 = vpop.xlane.xlu0 %393 }
 0x2d0   :  { %528 = vrcp.f32 %v394_v18 }
 0x2da   :  { %v529_v19 = vpop.eup %528 }
 0x2db   :  { %v396_v20 = vmul.f32 %v529_v19, %v394_v18 }
 0x2dd   :  { %v397_v21 = vsub.f32 2.0, %v396_v20 }
 0x2df   :  { %v398_v22 = vmul.f32 %v529_v19, %v397_v21 }
 0x2e1   :  { %v399_v23 = vmul.f32 %v527_v17, %v398_v22 }
 0x2e3   :  { %400 = vst [vmem:[#allocation8] sm:$0xff] %v399_v23 }
 0x2e4   :  { %585 = shalt.err (!%p582_p6)
}
 0x2e5   :  { %s586_s11 = scalar_lea.hbm %s748_s5, 128 }
 0x2e6   :  { %p587_p7 = scmp.ne.s32.totalorder %s748_s5, %s586_s11  ;;  %p590_p8 = scmp.lt.u32.totalorder %s586_s11, %s748_s5 }
 0x2e8   :  { %p592_p9 = pnand %p590_p8, %p587_p7 }
 0x2ea   :  { %595 = shalt.err (!%p592_p9)
}
 0x2eb   :  { %420 = dma.vmem_to_hbm [thread:$0]  %s418_s9, 128, %s748_s5, [#allocation9]  }
 0x2ec   :  { %598 = dma.done.wait [#allocation6], 128  }
 0x2ed   :  { %599 = vsyncadd [#allocation6], 4294967168 }
 0x2ee   :  { %600 = dma.done.wait [#allocation9], 128  }
 0x2ef   :  { %601 = vsyncadd [#allocation9], 4294967168 }
 0x2f0   :  { %427 = vsyncpa [#allocation5], 1 }
 0x2f1   :  { %428 = vsyncpa [#allocation6], 1 }
 0x2f2   :  { %429 = vsyncpa [#allocation9], 1 }

</bundles_post_ra>
